<compile_context>
chip_gen: v6e
topology: v6e:2x2x1
jax: 0.10.0
libtpu: 0.0.40
codegen_flags: <defaults>
</compile_context>

<pallas_src>
import math

import jax
import jax.numpy as jnp
from jax.experimental import pallas as pl
from jax.experimental.pallas import tpu as pltpu


def mixer_block_kernel(
    x_ref,        # (Bt, T, D)
    sln_w_ref,    # (1, D)   seq_layernorm weight
    sln_b_ref,    # (1, D)   seq_layernorm bias
    conv_w_ref,   # (T, T)   conv weight, ALREADY tril-masked in the wrapper
    conv_b_ref,   # (T, 1)   conv bias
    pln_w_ref,    # (1, D)   patch_layernorm weight
    pln_b_ref,    # (1, D)   patch_layernorm bias
    w1_ref,       # (D, 4D)  first Linear weight (pre-transposed: x @ W)
    b1_ref,       # (1, 4D)
    w2_ref,       # (4D, D)  second Linear weight (pre-transposed)
    b2_ref,       # (1, D)
    o_ref,        # (Bt, T, D)
):
    eps = jnp.float32(1e-5)
    Bt, T, D = x_ref.shape

    x = x_ref[...].astype(jnp.float32).reshape(Bt * T, D)   # fold batch into rows

    def layernorm(v, w, b):
        # one-pass stats: var = E[v^2] - E[v]^2 (saves a centered-square pass)
        mu = jnp.mean(v, axis=-1, keepdims=True)
        ms = jnp.mean(v * v, axis=-1, keepdims=True)
        var = ms - mu * mu
        return (v - mu) * jax.lax.rsqrt(var + eps) * w + b

    # ---- seq_layernorm (over D) ----
    xn = layernorm(x, sln_w_ref[0], sln_b_ref[0])            # (Bt*T, D)

    # ---- causal token-mixing "conv" (mask pre-applied in wrapper) ----
    # One shared (T, T) weight tile, Bt clean 2-D MXU matmuls on (T, D) slices
    # (no broadcast_to copies of the weight), stitched back along sublanes.
    conv_w = conv_w_ref[...]
    conv_b = conv_b_ref[...]                                  # (T, 1)
    ys = [
        jnp.dot(conv_w, xn[b * T:(b + 1) * T, :],
                preferred_element_type=jnp.float32) + conv_b
        for b in range(Bt)
    ]
    y = ys[0] if Bt == 1 else jnp.concatenate(ys, axis=0)     # (Bt*T, D)
    x1 = y + x                                                 # residual add #1

    # ---- patch_layernorm (over D) ----
    x1n = layernorm(x1, pln_w_ref[0], pln_b_ref[0])           # (Bt*T, D)

    # ---- FeedForward: Linear -> GELU (exact erf) -> Linear, folded rows ----
    h = jnp.dot(x1n, w1_ref[...], preferred_element_type=jnp.float32) + b1_ref[0]
    h = 0.5 * h * (1.0 + jax.lax.erf(h * jnp.float32(1.0 / math.sqrt(2.0))))
    out = jnp.dot(h, w2_ref[...], preferred_element_type=jnp.float32) + b2_ref[0]

    o_ref[...] = (out + x1).reshape(Bt, T, D).astype(o_ref.dtype)


def _tpu_vmem_bytes():
    """Physical per-core VMEM; fall back to the smallest (v7x) if unknown."""
    try:
        return int(pltpu.get_tpu_info().vmem_capacity_bytes)
    except Exception:
        return 64 << 20


def _choose_block_batch(B, T, D, inner, vmem_phys):
    """Pick Bt (batch rows per grid step) so Bt*T rows feed the MXU while the
    per-step activation footprint stays bounded; Bt must divide B and leave at
    least 2 grid steps (so both v7x TensorCores get work)."""
    big_vmem = vmem_phys >= (96 << 20)          # v5e / v6e class parts
    target_rows = 512 if big_vmem else 256
    act_budget = (24 << 20) if big_vmem else (10 << 20)
    row_bytes = (6 * D + 2 * inner) * 4         # rough fp32 live bytes / row
    cap = max(1, act_budget // max(1, T * row_bytes))
    bt = max(1, min(B, -(-target_rows // T), cap))   # cdiv(target_rows, T)
    if B >= 2:
        bt = min(bt, B // 2)                    # ensure >= 2 grid steps
    while B % bt:
        bt -= 1
    return bt


def mixer_block(x, params, *, block_batch=None):
    """x: (B, T, D) float32.  params: dict of weights (see init_params)."""
    B, T, D = x.shape
    inner = params["w1"].shape[1]

    # Hoist the causal mask out of the kernel (grid-invariant); mirrors the
    # in-place tril masking the PyTorch module does on conv.weight.
    conv_w_masked = jnp.tril(params["conv_w"])

    vmem_phys = _tpu_vmem_bytes()
    Bt = (block_batch if block_batch is not None
          else _choose_block_batch(B, T, D, inner, vmem_phys))
    assert B % Bt == 0, f"block_batch {Bt} must divide batch {B}"
    grid = (B // Bt,)

    # Grid-invariant weights: single-buffered (no point double-buffering blocks
    # whose index_map never changes).
    const = lambda shape: pl.BlockSpec(shape, lambda b: (0, 0),
                                       pipeline_mode=pl.Buffered(1))

    # Explicit VMEM budget; weights counted ONCE (Buffered(1)), x/out counted
    # double-buffered.  Cap generation-aware: leave headroom on 64 MiB parts.
    f32 = 4
    weight_bytes = (T * T + T + 4 * D + 2 * D * inner + inner + D) * f32
    act_bytes = Bt * T * (6 * D + 2 * inner) * f32
    io_bytes = 2 * 2 * Bt * T * D * f32
    vmem_cap = (100 << 20) if vmem_phys >= (96 << 20) else (48 << 20)
    vmem_limit = int(min(max(weight_bytes + act_bytes + io_bytes + (8 << 20),
                             32 << 20), vmem_cap))

    return pl.pallas_call(
        mixer_block_kernel,
        out_shape=jax.ShapeDtypeStruct((B, T, D), x.dtype),
        grid_spec=pltpu.PrefetchScalarGridSpec(
            num_scalar_prefetch=0,
            grid=grid,
            in_specs=[
                pl.BlockSpec((Bt, T, D), lambda b: (b, 0, 0)),   # x
                const((1, D)),           # seq ln weight
                const((1, D)),           # seq ln bias
                const((T, T)),           # conv weight (tril-masked)
                const((T, 1)),           # conv bias
                const((1, D)),           # patch ln weight
                const((1, D)),           # patch ln bias
                const((D, inner)),       # ff w1 (pre-transposed)
                const((1, inner)),       # ff b1
                const((inner, D)),       # ff w2 (pre-transposed)
                const((1, D)),           # ff b2
            ],
            out_specs=pl.BlockSpec((Bt, T, D), lambda b: (b, 0, 0)),
        ),
        compiler_params=pltpu.CompilerParams(
            dimension_semantics=("parallel",),
            vmem_limit_bytes=vmem_limit,
        ),
    )(
        x,
        params["sln_w"], params["sln_b"],
        conv_w_masked, params["conv_b"],
        params["pln_w"], params["pln_b"],
        params["w1"], params["b1"],
        params["w2"], params["b2"],
    )


def init_params(key, dim, length, expansion_factor=4):
    """Deterministic synthetic parameters matching MixerBlock(dim, length)."""
    inner = dim * expansion_factor
    ks = jax.random.split(key, 6)
    s_conv = 1.0 / math.sqrt(length)
    s_l1 = 1.0 / math.sqrt(dim)
    s_l2 = 1.0 / math.sqrt(inner)
    return {
        # LayerNorms init like PyTorch: weight=1, bias=0
        "sln_w": jnp.ones((1, dim), jnp.float32),
        "sln_b": jnp.zeros((1, dim), jnp.float32),
        "pln_w": jnp.ones((1, dim), jnp.float32),
        "pln_b": jnp.zeros((1, dim), jnp.float32),
        # Conv1d(length, length, 1): weight (length, length, 1) -> (T, T)
        "conv_w": jax.random.uniform(ks[0], (length, length), jnp.float32,
                                     -s_conv, s_conv),
        "conv_b": jax.random.uniform(ks[1], (length, 1), jnp.float32,
                                     -s_conv, s_conv),
        # Linear(dim, inner): torch weight (inner, dim) stored transposed.
        "w1": jax.random.uniform(ks[2], (dim, inner), jnp.float32, -s_l1, s_l1),
        "b1": jax.random.uniform(ks[3], (1, inner), jnp.float32, -s_l1, s_l1),
        # Linear(inner, dim): torch weight (dim, inner) stored transposed.
        "w2": jax.random.uniform(ks[4], (inner, dim), jnp.float32, -s_l2, s_l2),
        "b2": jax.random.uniform(ks[5], (1, dim), jnp.float32, -s_l2, s_l2),
    }


def mixer_block_ref(x, params):
    """Pure-JAX reference of the PyTorch forward (mixer_mask=True, expand_conv=False)."""
    eps = 1e-5

    def ln(v, w, b):
        mu = jnp.mean(v, axis=-1, keepdims=True)
        var = jnp.mean((v - mu) ** 2, axis=-1, keepdims=True)
        return (v - mu) / jnp.sqrt(var + eps) * w + b

    residual = x
    xn = ln(x, params["sln_w"][0], params["sln_b"][0])
    w_masked = jnp.tril(params["conv_w"])
    y = jnp.einsum("ft,btd->bfd", w_masked, xn) + params["conv_b"][None, :, :]
    x1 = y + residual

    x1n = ln(x1, params["pln_w"][0], params["pln_b"][0])
    h = x1n @ params["w1"] + params["b1"][0]
    h = 0.5 * h * (1.0 + jax.lax.erf(h / jnp.sqrt(2.0)))
    out = h @ params["w2"] + params["b2"][0]
    return out + x1


if __name__ == "__main__":
    B, T, D = 8, 8, 32   # batch, length (tokens), dim (features)

    key = jax.random.PRNGKey(0)
    kx, kp = jax.random.split(key)
    x = jax.random.normal(kx, (B, T, D), jnp.float32)
    params = init_params(kp, dim=D, length=T)

    ref = mixer_block_ref(x, params)

    # Default: heuristic Bt (=4 here), grid=(2,) -> both v7x TCs get a step.
    out = jax.block_until_ready(mixer_block(x, params))
    assert out.shape == (B, T, D)
    assert jnp.allclose(out, ref, atol=1e-4, rtol=1e-4), (
        f"max abs err {jnp.max(jnp.abs(out - ref))}")

    # Smaller block (Bt=2, grid=(4,)) to exercise the batch index_map.
    out2 = jax.block_until_ready(mixer_block(x, params, block_batch=2))
    assert jnp.allclose(out2, ref, atol=1e-4, rtol=1e-4), (
        f"max abs err {jnp.max(jnp.abs(out2 - ref))}")

    # Bt=1 path (single 2-D token-mix matmul, no concatenate), grid=(8,).
    out3 = jax.block_until_ready(mixer_block(x, params, block_batch=1))
    assert jnp.allclose(out3, ref, atol=1e-4, rtol=1e-4), (
        f"max abs err {jnp.max(jnp.abs(out3 - ref))}")

    print("KERNEL_OK")
</pallas_src>

<mosaic_0001>
module attributes {stable_mosaic.version = 11 : i64} {
  func.func @mixer_block_kernel(%arg0: i32, %arg1: memref<4x8x32xf32, #tpu.memory_space<vmem>>, %arg2: memref<1x32xf32, #tpu.memory_space<vmem>>, %arg3: memref<1x32xf32, #tpu.memory_space<vmem>>, %arg4: memref<8x8xf32, #tpu.memory_space<vmem>>, %arg5: memref<8x1xf32, #tpu.memory_space<vmem>>, %arg6: memref<1x32xf32, #tpu.memory_space<vmem>>, %arg7: memref<1x32xf32, #tpu.memory_space<vmem>>, %arg8: memref<32x128xf32, #tpu.memory_space<vmem>>, %arg9: memref<1x128xf32, #tpu.memory_space<vmem>>, %arg10: memref<128x32xf32, #tpu.memory_space<vmem>>, %arg11: memref<1x32xf32, #tpu.memory_space<vmem>>, %arg12: memref<4x8x32xf32, #tpu.memory_space<vmem>>) attributes {dimension_semantics = [#tpu.dimension_semantics<parallel>], iteration_bounds = array<i64: 2>, scalar_prefetch = 0 : i64, scratch_operands = 0 : i64, tpu.core_type = #tpu.core_type<tc>, window_params = [{transform_indices = @transform_0, window_bounds = array<i64: 4, 8, 32>}, {pipeline_mode = #tpu.pipeline_mode<synchronous>, transform_indices = @transform_1, window_bounds = array<i64: 1, 32>}, {pipeline_mode = #tpu.pipeline_mode<synchronous>, transform_indices = @transform_2, window_bounds = array<i64: 1, 32>}, {pipeline_mode = #tpu.pipeline_mode<synchronous>, transform_indices = @transform_3, window_bounds = array<i64: 8, 8>}, {pipeline_mode = #tpu.pipeline_mode<synchronous>, transform_indices = @transform_4, window_bounds = array<i64: 8, 1>}, {pipeline_mode = #tpu.pipeline_mode<synchronous>, transform_indices = @transform_5, window_bounds = array<i64: 1, 32>}, {pipeline_mode = #tpu.pipeline_mode<synchronous>, transform_indices = @transform_6, window_bounds = array<i64: 1, 32>}, {pipeline_mode = #tpu.pipeline_mode<synchronous>, transform_indices = @transform_7, window_bounds = array<i64: 32, 128>}, {pipeline_mode = #tpu.pipeline_mode<synchronous>, transform_indices = @transform_8, window_bounds = array<i64: 1, 128>}, {pipeline_mode = #tpu.pipeline_mode<synchronous>, transform_indices = @transform_9, window_bounds = array<i64: 128, 32>}, {pipeline_mode = #tpu.pipeline_mode<synchronous>, transform_indices = @transform_10, window_bounds = array<i64: 1, 32>}, {transform_indices = @transform_11, window_bounds = array<i64: 4, 8, 32>}]} {
    %c0 = arith.constant 0 : index
    %c0_0 = arith.constant 0 : index
    %c0_1 = arith.constant 0 : index
    %0 = vector.load %arg1[%c0, %c0_0, %c0_1] : memref<4x8x32xf32, #tpu.memory_space<vmem>>, vector<4x8x32xf32>
    %1 = vector.shape_cast %0 : vector<4x8x32xf32> to vector<32x32xf32>
    %c0_2 = arith.constant 0 : index
    %c0_3 = arith.constant 0 : index
    %2 = vector.load %arg2[%c0_2, %c0_3] : memref<1x32xf32, #tpu.memory_space<vmem>>, vector<1x32xf32>
    %3 = vector.shape_cast %2 : vector<1x32xf32> to vector<32xf32>
    %c0_4 = arith.constant 0 : index
    %c0_5 = arith.constant 0 : index
    %4 = vector.load %arg3[%c0_4, %c0_5] : memref<1x32xf32, #tpu.memory_space<vmem>>, vector<1x32xf32>
    %5 = vector.shape_cast %4 : vector<1x32xf32> to vector<32xf32>
    %cst = arith.constant dense<0.000000e+00> : vector<32xf32>
    %6 = vector.multi_reduction <add>, %1, %cst [1] : vector<32x32xf32> to vector<32xf32>
    %7 = vector.shape_cast %6 : vector<32xf32> to vector<32x1xf32>
    %cst_6 = arith.constant 3.200000e+01 : f32
    %8 = vector.broadcast %cst_6 : f32 to vector<32x1xf32>
    %9 = arith.divf %7, %8 : vector<32x1xf32>
    %10 = arith.mulf %1, %1 : vector<32x32xf32>
    %cst_7 = arith.constant dense<0.000000e+00> : vector<32xf32>
    %11 = vector.multi_reduction <add>, %10, %cst_7 [1] : vector<32x32xf32> to vector<32xf32>
    %12 = vector.shape_cast %11 : vector<32xf32> to vector<32x1xf32>
    %cst_8 = arith.constant 3.200000e+01 : f32
    %13 = vector.broadcast %cst_8 : f32 to vector<32x1xf32>
    %14 = arith.divf %12, %13 : vector<32x1xf32>
    %15 = arith.mulf %9, %9 : vector<32x1xf32>
    %16 = arith.subf %14, %15 : vector<32x1xf32>
    %17 = vector.broadcast %9 : vector<32x1xf32> to vector<32x32xf32>
    %18 = arith.subf %1, %17 : vector<32x32xf32>
    %cst_9 = arith.constant 9.99999974E-6 : f32
    %19 = vector.broadcast %cst_9 : f32 to vector<32x1xf32>
    %20 = arith.addf %16, %19 : vector<32x1xf32>
    %21 = math.rsqrt %20 : vector<32x1xf32>
    %22 = vector.broadcast %21 : vector<32x1xf32> to vector<32x32xf32>
    %23 = arith.mulf %18, %22 : vector<32x32xf32>
    %24 = vector.shape_cast %3 : vector<32xf32> to vector<1x32xf32>
    %25 = vector.broadcast %24 : vector<1x32xf32> to vector<32x32xf32>
    %26 = arith.mulf %23, %25 : vector<32x32xf32>
    %27 = vector.shape_cast %5 : vector<32xf32> to vector<1x32xf32>
    %28 = vector.broadcast %27 : vector<1x32xf32> to vector<32x32xf32>
    %29 = arith.addf %26, %28 : vector<32x32xf32>
    %c0_10 = arith.constant 0 : index
    %c0_11 = arith.constant 0 : index
    %30 = vector.load %arg4[%c0_10, %c0_11] : memref<8x8xf32, #tpu.memory_space<vmem>>, vector<8x8xf32>
    %c0_12 = arith.constant 0 : index
    %c0_13 = arith.constant 0 : index
    %31 = vector.load %arg5[%c0_12, %c0_13] : memref<8x1xf32, #tpu.memory_space<vmem>>, vector<8x1xf32>
    %32 = vector.extract_strided_slice %29 {offsets = [0, 0], sizes = [8, 32], strides = [1, 1]} : vector<32x32xf32> to vector<8x32xf32>
    %cst_14 = arith.constant dense<0.000000e+00> : vector<8x32xf32>
    %33 = tpu.matmul %30, %32, %cst_14 {dimension_numbers = #tpu.dot_dimension_numbers<[1], [0], [0], [1], [0, 0, 1, 1], [], []>} : vector<8x8xf32>, vector<8x32xf32>, vector<8x32xf32> -> vector<8x32xf32>
    %34 = vector.broadcast %31 : vector<8x1xf32> to vector<8x32xf32>
    %35 = arith.addf %33, %34 : vector<8x32xf32>
    %36 = vector.extract_strided_slice %29 {offsets = [8, 0], sizes = [8, 32], strides = [1, 1]} : vector<32x32xf32> to vector<8x32xf32>
    %cst_15 = arith.constant dense<0.000000e+00> : vector<8x32xf32>
    %37 = tpu.matmul %30, %36, %cst_15 {dimension_numbers = #tpu.dot_dimension_numbers<[1], [0], [0], [1], [0, 0, 1, 1], [], []>} : vector<8x8xf32>, vector<8x32xf32>, vector<8x32xf32> -> vector<8x32xf32>
    %38 = vector.broadcast %31 : vector<8x1xf32> to vector<8x32xf32>
    %39 = arith.addf %37, %38 : vector<8x32xf32>
    %40 = vector.extract_strided_slice %29 {offsets = [16, 0], sizes = [8, 32], strides = [1, 1]} : vector<32x32xf32> to vector<8x32xf32>
    %cst_16 = arith.constant dense<0.000000e+00> : vector<8x32xf32>
    %41 = tpu.matmul %30, %40, %cst_16 {dimension_numbers = #tpu.dot_dimension_numbers<[1], [0], [0], [1], [0, 0, 1, 1], [], []>} : vector<8x8xf32>, vector<8x32xf32>, vector<8x32xf32> -> vector<8x32xf32>
    %42 = vector.broadcast %31 : vector<8x1xf32> to vector<8x32xf32>
    %43 = arith.addf %41, %42 : vector<8x32xf32>
    %44 = vector.extract_strided_slice %29 {offsets = [24, 0], sizes = [8, 32], strides = [1, 1]} : vector<32x32xf32> to vector<8x32xf32>
    %cst_17 = arith.constant dense<0.000000e+00> : vector<8x32xf32>
    %45 = tpu.matmul %30, %44, %cst_17 {dimension_numbers = #tpu.dot_dimension_numbers<[1], [0], [0], [1], [0, 0, 1, 1], [], []>} : vector<8x8xf32>, vector<8x32xf32>, vector<8x32xf32> -> vector<8x32xf32>
    %46 = vector.broadcast %31 : vector<8x1xf32> to vector<8x32xf32>
    %47 = arith.addf %45, %46 : vector<8x32xf32>
    %48 = tpu.concatenate %35, %39, %43, %47 in 0 : vector<8x32xf32>, vector<8x32xf32>, vector<8x32xf32>, vector<8x32xf32> -> vector<32x32xf32>
    %49 = arith.addf %48, %1 : vector<32x32xf32>
    %c0_18 = arith.constant 0 : index
    %c0_19 = arith.constant 0 : index
    %50 = vector.load %arg6[%c0_18, %c0_19] : memref<1x32xf32, #tpu.memory_space<vmem>>, vector<1x32xf32>
    %51 = vector.shape_cast %50 : vector<1x32xf32> to vector<32xf32>
    %c0_20 = arith.constant 0 : index
    %c0_21 = arith.constant 0 : index
    %52 = vector.load %arg7[%c0_20, %c0_21] : memref<1x32xf32, #tpu.memory_space<vmem>>, vector<1x32xf32>
    %53 = vector.shape_cast %52 : vector<1x32xf32> to vector<32xf32>
    %cst_22 = arith.constant dense<0.000000e+00> : vector<32xf32>
    %54 = vector.multi_reduction <add>, %49, %cst_22 [1] : vector<32x32xf32> to vector<32xf32>
    %55 = vector.shape_cast %54 : vector<32xf32> to vector<32x1xf32>
    %cst_23 = arith.constant 3.200000e+01 : f32
    %56 = vector.broadcast %cst_23 : f32 to vector<32x1xf32>
    %57 = arith.divf %55, %56 : vector<32x1xf32>
    %58 = arith.mulf %49, %49 : vector<32x32xf32>
    %cst_24 = arith.constant dense<0.000000e+00> : vector<32xf32>
    %59 = vector.multi_reduction <add>, %58, %cst_24 [1] : vector<32x32xf32> to vector<32xf32>
    %60 = vector.shape_cast %59 : vector<32xf32> to vector<32x1xf32>
    %cst_25 = arith.constant 3.200000e+01 : f32
    %61 = vector.broadcast %cst_25 : f32 to vector<32x1xf32>
    %62 = arith.divf %60, %61 : vector<32x1xf32>
    %63 = arith.mulf %57, %57 : vector<32x1xf32>
    %64 = arith.subf %62, %63 : vector<32x1xf32>
    %65 = vector.broadcast %57 : vector<32x1xf32> to vector<32x32xf32>
    %66 = arith.subf %49, %65 : vector<32x32xf32>
    %cst_26 = arith.constant 9.99999974E-6 : f32
    %67 = vector.broadcast %cst_26 : f32 to vector<32x1xf32>
    %68 = arith.addf %64, %67 : vector<32x1xf32>
    %69 = math.rsqrt %68 : vector<32x1xf32>
    %70 = vector.broadcast %69 : vector<32x1xf32> to vector<32x32xf32>
    %71 = arith.mulf %66, %70 : vector<32x32xf32>
    %72 = vector.shape_cast %51 : vector<32xf32> to vector<1x32xf32>
    %73 = vector.broadcast %72 : vector<1x32xf32> to vector<32x32xf32>
    %74 = arith.mulf %71, %73 : vector<32x32xf32>
    %75 = vector.shape_cast %53 : vector<32xf32> to vector<1x32xf32>
    %76 = vector.broadcast %75 : vector<1x32xf32> to vector<32x32xf32>
    %77 = arith.addf %74, %76 : vector<32x32xf32>
    %c0_27 = arith.constant 0 : index
    %c0_28 = arith.constant 0 : index
    %78 = vector.load %arg8[%c0_27, %c0_28] : memref<32x128xf32, #tpu.memory_space<vmem>>, vector<32x128xf32>
    %cst_29 = arith.constant dense<0.000000e+00> : vector<32x128xf32>
    %79 = tpu.matmul %77, %78, %cst_29 {dimension_numbers = #tpu.dot_dimension_numbers<[1], [0], [0], [1], [0, 0, 1, 1], [], []>} : vector<32x32xf32>, vector<32x128xf32>, vector<32x128xf32> -> vector<32x128xf32>
    %c0_30 = arith.constant 0 : index
    %c0_31 = arith.constant 0 : index
    %80 = vector.load %arg9[%c0_30, %c0_31] : memref<1x128xf32, #tpu.memory_space<vmem>>, vector<1x128xf32>
    %81 = vector.shape_cast %80 : vector<1x128xf32> to vector<128xf32>
    %82 = vector.shape_cast %81 : vector<128xf32> to vector<1x128xf32>
    %83 = vector.broadcast %82 : vector<1x128xf32> to vector<32x128xf32>
    %84 = arith.addf %79, %83 : vector<32x128xf32>
    %cst_32 = arith.constant 5.000000e-01 : f32
    %85 = vector.broadcast %cst_32 : f32 to vector<32x128xf32>
    %86 = arith.mulf %85, %84 : vector<32x128xf32>
    %cst_33 = arith.constant 0.707106769 : f32
    %87 = vector.broadcast %cst_33 : f32 to vector<32x128xf32>
    %88 = arith.mulf %84, %87 : vector<32x128xf32>
    %89 = math.erf %88 : vector<32x128xf32>
    %cst_34 = arith.constant 1.000000e+00 : f32
    %90 = vector.broadcast %cst_34 : f32 to vector<32x128xf32>
    %91 = arith.addf %90, %89 : vector<32x128xf32>
    %92 = arith.mulf %86, %91 : vector<32x128xf32>
    %c0_35 = arith.constant 0 : index
    %c0_36 = arith.constant 0 : index
    %93 = vector.load %arg10[%c0_35, %c0_36] : memref<128x32xf32, #tpu.memory_space<vmem>>, vector<128x32xf32>
    %cst_37 = arith.constant dense<0.000000e+00> : vector<32x32xf32>
    %94 = tpu.matmul %92, %93, %cst_37 {dimension_numbers = #tpu.dot_dimension_numbers<[1], [0], [0], [1], [0, 0, 1, 1], [], []>} : vector<32x128xf32>, vector<128x32xf32>, vector<32x32xf32> -> vector<32x32xf32>
    %c0_38 = arith.constant 0 : index
    %c0_39 = arith.constant 0 : index
    %95 = vector.load %arg11[%c0_38, %c0_39] : memref<1x32xf32, #tpu.memory_space<vmem>>, vector<1x32xf32>
    %96 = vector.shape_cast %95 : vector<1x32xf32> to vector<32xf32>
    %97 = vector.shape_cast %96 : vector<32xf32> to vector<1x32xf32>
    %98 = vector.broadcast %97 : vector<1x32xf32> to vector<32x32xf32>
    %99 = arith.addf %94, %98 : vector<32x32xf32>
    %100 = arith.addf %99, %49 : vector<32x32xf32>
    %101 = vector.shape_cast %100 : vector<32x32xf32> to vector<4x8x32xf32>
    %c0_40 = arith.constant 0 : index
    %c0_41 = arith.constant 0 : index
    %c0_42 = arith.constant 0 : index
    %102 = vector.load %arg12[%c0_40, %c0_41, %c0_42] : memref<4x8x32xf32, #tpu.memory_space<vmem>>, vector<4x8x32xf32>
    tpu.vector_store %arg12[%c0_40, %c0_41, %c0_42], %101 {strides = array<i32>} : memref<4x8x32xf32, #tpu.memory_space<vmem>>, vector<4x8x32xf32>,
    return
  }
  func.func @transform_0(%arg0: i32) -> (i32, i32, i32) {
    %c0_i32 = arith.constant 0 : i32
    %c0_i32_0 = arith.constant 0 : i32
    %c0_i32_1 = arith.constant 0 : i32
    return %arg0, %c0_i32, %c0_i32_0 : i32, i32, i32
  }
  func.func @transform_1(%arg0: i32) -> (i32, i32) {
    %c0_i32 = arith.constant 0 : i32
    %c0_i32_0 = arith.constant 0 : i32
    %c0_i32_1 = arith.constant 0 : i32
    return %c0_i32, %c0_i32_0 : i32, i32
  }
  func.func @transform_2(%arg0: i32) -> (i32, i32) {
    %c0_i32 = arith.constant 0 : i32
    %c0_i32_0 = arith.constant 0 : i32
    %c0_i32_1 = arith.constant 0 : i32
    return %c0_i32, %c0_i32_0 : i32, i32
  }
  func.func @transform_3(%arg0: i32) -> (i32, i32) {
    %c0_i32 = arith.constant 0 : i32
    %c0_i32_0 = arith.constant 0 : i32
    %c0_i32_1 = arith.constant 0 : i32
    return %c0_i32, %c0_i32_0 : i32, i32
  }
  func.func @transform_4(%arg0: i32) -> (i32, i32) {
    %c0_i32 = arith.constant 0 : i32
    %c0_i32_0 = arith.constant 0 : i32
    %c0_i32_1 = arith.constant 0 : i32
    return %c0_i32, %c0_i32_0 : i32, i32
  }
  func.func @transform_5(%arg0: i32) -> (i32, i32) {
    %c0_i32 = arith.constant 0 : i32
    %c0_i32_0 = arith.constant 0 : i32
    %c0_i32_1 = arith.constant 0 : i32
    return %c0_i32, %c0_i32_0 : i32, i32
  }
  func.func @transform_6(%arg0: i32) -> (i32, i32) {
    %c0_i32 = arith.constant 0 : i32
    %c0_i32_0 = arith.constant 0 : i32
    %c0_i32_1 = arith.constant 0 : i32
    return %c0_i32, %c0_i32_0 : i32, i32
  }
  func.func @transform_7(%arg0: i32) -> (i32, i32) {
    %c0_i32 = arith.constant 0 : i32
    %c0_i32_0 = arith.constant 0 : i32
    %c0_i32_1 = arith.constant 0 : i32
    return %c0_i32, %c0_i32_0 : i32, i32
  }
  func.func @transform_8(%arg0: i32) -> (i32, i32) {
    %c0_i32 = arith.constant 0 : i32
    %c0_i32_0 = arith.constant 0 : i32
    %c0_i32_1 = arith.constant 0 : i32
    return %c0_i32, %c0_i32_0 : i32, i32
  }
  func.func @transform_9(%arg0: i32) -> (i32, i32) {
    %c0_i32 = arith.constant 0 : i32
    %c0_i32_0 = arith.constant 0 : i32
    %c0_i32_1 = arith.constant 0 : i32
    return %c0_i32, %c0_i32_0 : i32, i32
  }
  func.func @transform_10(%arg0: i32) -> (i32, i32) {
    %c0_i32 = arith.constant 0 : i32
    %c0_i32_0 = arith.constant 0 : i32
    %c0_i32_1 = arith.constant 0 : i32
    return %c0_i32, %c0_i32_0 : i32, i32
  }
  func.func @transform_11(%arg0: i32) -> (i32, i32, i32) {
    %c0_i32 = arith.constant 0 : i32
    %c0_i32_0 = arith.constant 0 : i32
    %c0_i32_1 = arith.constant 0 : i32
    return %arg0, %c0_i32, %c0_i32_0 : i32, i32, i32
  }
}

</mosaic_0001>

<bundles_post_ra>
// kernel: tpu_custom_call.1
= control target key start
LH: loop header
LB: loop body
LE: loop exit
PB: predicated region body
PF: predicated region fallthrough
CT: control target
= control target key end

     0   :  { %s1786_s0 = inlined_call_operand.vmem [shape: f32[8,8,32], index: 0, kind: input, shape index: {}]   ;;  %s1787_s1 = inlined_call_operand.vmem [shape: f32[1,32], index: 1, kind: input, shape index: {}]   ;;  %s1788_s2 = inlined_call_operand.vmem [shape: f32[1,32], index: 2, kind: input, shape index: {}]   ;;  %s1789_s3 = inlined_call_operand.vmem [shape: f32[8,8], index: 3, kind: input, shape index: {}]   ;;  %s1790_s4 = inlined_call_operand.vmem [shape: f32[8,1], index: 4, kind: input, shape index: {}]   ;;  %s1791_s5 = inlined_call_operand.vmem [shape: f32[1,32], index: 5, kind: input, shape index: {}]   ;;  %s1792_s6 = inlined_call_operand.vmem [shape: f32[1,32], index: 6, kind: input, shape index: {}]   ;;  %s1793_s7 = inlined_call_operand.vmem [shape: f32[32,128], index: 7, kind: input, shape index: {}]   ;;  %s1794_s8 = inlined_call_operand.vmem [shape: f32[1,128], index: 8, kind: input, shape index: {}]   ;;  %s1795_s9 = inlined_call_operand.vmem [shape: f32[128,32], index: 9, kind: input, shape index: {}]   ;;  %s1796_s10 = inlined_call_operand.vmem [shape: f32[1,32], index: 10, kind: input, shape index: {}]   ;;  %s1797_s11 = inlined_call_operand.hbm [shape: f32[8,8,32], index: 11, kind: output, shape index: {}]  }
   0x1   :  { %1798 = sst [smem:[#allocation5_spill]] %s1786_s0 }
   0x2   :  { %16 = vsyncpa [#allocation3], 0 }
   0x3   :  { %18 = vsyncpa [#allocation3 + $0x1], 0  ;;  %s1505_s17 = smov 0   ;;  %s1507_s18 = smov 0  }
   0x4   :  { %s1509_s19 = smov 0   ;;  %s1511_s20 = smov 0  }
   0x5 LB: > { %s1526_s21 = sadd.s32 4294967295, %s1437_s20   ;;  %s1173_s22 = sadd.s32 4294967294, %s1437_s20   ;;  %s1437_s20 = sphi %s1511_s20, %s1805_s20   ;;  %s1433_s19 = sphi %s1509_s19, %s1804_s19   ;;  %s1429_s18 = sphi %s1507_s18, %s1803_s18   ;;  %s1425_s17 = sphi %s1505_s17, %s1802_s17  }
   0x6   : > { %s1530_s23 = sadd.s32 1, %s1437_s20   ;;  %s267_s24 = sadd.s32 1, %s1433_s19 }
   0x7   : > { %s264_s25 = ssub.s32 %s1437_s20, %s1530_s23  ;;  %p277_p0 = scmp.ne.s32.totalorder %s1433_s19, %s1429_s18 }
   0x8   : > { %p265_p1 = scmp.eq.s32.totalorder %s264_s25, 0  ;;  %p278_p2 = scmp.eq.s32.totalorder %s1526_s21, 1 }
   0x9   : > { %p283_p3 = scmp.ne.s32.totalorder %s1429_s18, %s1425_s17  ;;  %p284_p4 = scmp.eq.s32.totalorder %s1173_s22, 1 }
   0xa   : > { %s1541_s26 = scalar_select %p265_p1, %s1433_s19, %s267_s24  }
   0xb   : > { %p1543_p5 = por %p278_p2, %p277_p0  ;;  %p1547_p6 = por %p284_p4, %p283_p3 }
   0xc   : > { %p1176_p7 = scmp.ge.s32.totalorder %s1437_s20, 1  ;;  %p341_p8 = scmp.lt.s32.totalorder %s1437_s20, 3 }
   0xe   : > { %p342_p9 = pnand %p1176_p7, %p341_p8 }
   0xf   : > { %s1178_s29 = sshll.u32 (!%p342_p9), %s1526_s21, 2  ;;  %s1801_s0 = sld [smem:[#allocation5_spill]] (!%p342_p9) }
  0x10   : > { %345 = sbr.rel (%p342_p9) target bundleno = 1017 (0x3f9), region = 64  ;;  %p382_p10 = scmp.lt.s32.totalorder (!%p342_p9), %s1178_s29, 7 }
  0x11   : > { %s378_s25 = sand.u32 (!%p342_p9), 1, %s1429_s18   ;;  %s1199_s15 = sshll.u32 (!%p342_p9), %s1526_s21, 9 }
  0x12   : > { %s1177_s12 = sshll.u32 (!%p342_p9), %s378_s25, 5  ;;  %s1739_s24 = scalar_lea.hbm (!%p342_p9), %s1797_s11, %s1199_s15 }
  0x13   : > { %s380_s13 = scalar_lea.vmem (!%p342_p9), [#allocation2], %s1177_s12  ;;  %s1746_s21 = scalar_lea.sflag (!%p342_p9), [#allocation3], %s378_s25 }
  0x15   : > { %s1807_s29 = smov (!%p382_p10, %s1178_s29), 7  ;;  %vm394_vm0 = vcmask 261120   ;;  %v1439_v16 = vmov 0.0   ;;  %vm1440_vm1 = vmmov 0   ;;  %v477_v17 = vld [vmem:[%s1790_s4] sm:$0xff]  ;;  %v1441_v18 = vmov 0  }
  0x16   : > { %s1179_s30 = sshll.u32 %s1807_s29, 3  ;;  %1236 = vmatprep.subr.mxu0 %v1439_v16  ;;  %1238 = vmatprep.mubr.msk.f32.mxu0 %vm1440_vm1, %v1439_v16  ;;  %v1180_v51 = vld [vmem:[%s1787_s1] ss:$0 sm:$0xff]  ;;  %vm483_vm2 = vcmask 64512  }
  0x17   : > { %s385_s14 = scalar_lea.vmem %s1801_s0, %s1179_s30  ;;  %1352 = vset.pattern.permute.xlu0 %v1441_v18  ;;  %v1181_v54 = vld [vmem:[%s1788_s2] ss:$0 sm:$0xff]  ;;  %s1442_s30 = smov [#allocation2]  }
  0x18   : > { %v1557_v0 = vld [vmem:[%s385_s14 + $0x8] sm:$0xff]  ;;  %v1559_v1 = vld [vmem:[%s385_s14] sm:$0xff]  ;;  %v1561_v2 = vld [vmem:[%s385_s14 + $0x10] sm:$0xff]  ;;  %s1381_s12 = sshll.u32 %s1442_s30, 4  ;;  %s1382_s12 = int_to_ptr.vmem [resolvable:$false] %s1381_s12 }
  0x19   : > { %v398_v3 = vsel %vm394_vm0, %v1557_v0, 0.0  ;;  %v395_v4 = vsel %vm394_vm0, %v1559_v1, 0.0  ;;  %v413_v5 = vmul.f32 %v1557_v0, %v1557_v0  ;;  %v412_v6 = vmul.f32 %v1559_v1, %v1559_v1  ;;  %v1575_v10 = vld [vmem:[%s385_s14 + $0x18] sm:$0xff]  ;;  %v476_v60 = vld [vmem:[%s1789_s3] sm:$0xff]  ;;  %s1111_s14 = sshll.u32 %s380_s13, 4  ;;  %s1383_s15 = scalar_lea.vmem %s1382_s12, 1024  ;;  %s1741_s14 = int_to_ptr.vmem [resolvable:$true] %s1111_s14 }
  0x1a   : > { %399 = vadd.xlane.f32.xlu1 %v398_v3  ;;  %396 = vadd.xlane.f32.xlu0 %v395_v4  ;;  %v414_v9 = vmul.f32 %v1561_v2, %v1561_v2  ;;  %v401_v11 = vsel %vm394_vm0, %v1561_v2, 0.0  ;;  %v415_v13 = vmul.f32 %v1575_v10, %v1575_v10  ;;  %v404_v14 = vsel %vm394_vm0, %v1575_v10, 0.0  ;;  %s1377_s29 = scalar_lea.vmem %s1741_s14, 512  ;;  %p1384_p0 = scmp.lt.s32.totalorder %s1741_s14, %s1382_s12 }
  0x1b   : > { %v419_v7 = vsel %vm394_vm0, %v413_v5, 0.0  ;;  %v416_v8 = vsel %vm394_vm0, %v412_v6, 0.0  ;;  %p1378_p11 = scmp.ne.s32.totalorder %s1741_s14, %s1377_s29  ;;  %p1385_p1 = scmp.lt.s32.totalorder %s1383_s15, %s1377_s29 }
  0x1c   : > { %v422_v12 = vsel %vm394_vm0, %v414_v9, 0.0  ;;  %v425_v15 = vsel %vm394_vm0, %v415_v13, 0.0 }
  0x1d   : > { %p1379_p12 = pnand %p1378_p11, %p1543_p5  ;;  %p1386_p2 = por %p1385_p1, %p1384_p0 }
  0x1e   : > { %420 = vadd.xlane.f32.xlu1 %v419_v7  ;;  %417 = vadd.xlane.f32.xlu0 %v416_v8 }
  0x1f   : > { %p1380_p13 = pneg %p1379_p12 }
  0x21   : > { %p1387_p3 = pnand %p1386_p2, %p1380_p13 }
  0x22   : > { %402 = vadd.xlane.f32.xlu0 %v401_v11  ;;  %423 = vadd.xlane.f32.xlu1 %v422_v12 }
  0x26   : > { %405 = vadd.xlane.f32.xlu0 %v404_v14  ;;  %426 = vadd.xlane.f32.xlu1 %v425_v15 }
  0x3c   : > { %480 = vperm.xlu0 %1352, %v477_v17  }
  0xa3   : > { %v400_v19 = vpop.xlane.xlu1 %399  ;;  %v397_v20 = vpop.xlane.xlu0 %396 }
  0xa4   : > { %v409_v21 = vmul.f32 0.03125, %v400_v19  ;;  %v408_v22 = vmul.f32 0.03125, %v397_v20 }
  0xa6   : > { %v433_v23 = vmul.f32 %v409_v21, %v409_v21  ;;  %v432_v26 = vmul.f32 %v408_v22, %v408_v22  ;;  %v441_v47 = vsub.f32 %v1557_v0, %v409_v21  ;;  %v440_v49 = vsub.f32 %v1559_v1, %v408_v22 }
  0xa7   : > { %v421_v24 = vpop.xlane.xlu1 %420  ;;  %v418_v25 = vpop.xlane.xlu0 %417 }
  0xa8   : > { %v429_v27 = vmul.f32 0.03125, %v421_v24  ;;  %v428_v28 = vmul.f32 0.03125, %v418_v25 }
  0xaa   : > { %v437_v29 = vsub.f32 %v429_v27, %v433_v23  ;;  %v436_v30 = vsub.f32 %v428_v28, %v432_v26 }
  0xab   : > { %v403_v31 = vpop.xlane.xlu0 %402  ;;  %v424_v32 = vpop.xlane.xlu1 %423 }
  0xac   : > { %v445_v33 = vadd.f32 1e-05, %v437_v29  ;;  %v444_v34 = vadd.f32 1e-05, %v436_v30  ;;  %v410_v35 = vmul.f32 0.03125, %v403_v31  ;;  %v430_v36 = vmul.f32 0.03125, %v424_v32 }
  0xae   : > { %1353 = vrsqrt.f32 %v445_v33  ;;  %v434_v37 = vmul.f32 %v410_v35, %v410_v35  ;;  %v442_v57 = vsub.f32 %v1561_v2, %v410_v35 }
  0xaf   : > { %1355 = vrsqrt.f32 %v444_v34  ;;  %v406_v38 = vpop.xlane.xlu0 %405  ;;  %v427_v39 = vpop.xlane.xlu1 %426 }
  0xb0   : > { %v438_v40 = vsub.f32 %v430_v36, %v434_v37  ;;  %v411_v41 = vmul.f32 0.03125, %v406_v38  ;;  %v431_v42 = vmul.f32 0.03125, %v427_v39  ;;  %v856_v36 = vld [vmem:[%s1793_s7 + $0x18] sm:$0xff]  ;;  %v854_v37 = vld [vmem:[%s1793_s7 + $0x8] sm:$0xff]  ;;  %v853_v38 = vld [vmem:[%s1793_s7] sm:$0xff] }
  0xb1   : > { %v996_v39 = vld [vmem:[%s1795_s9 + $0x78] sm:$0xff] }
  0xb2   : > { %v446_v43 = vadd.f32 1e-05, %v438_v40  ;;  %v435_v44 = vmul.f32 %v411_v41, %v411_v41  ;;  %v443_v63 = vsub.f32 %v1575_v10, %v411_v41  ;;  %v995_v40 = vld [vmem:[%s1795_s9 + $0x70] sm:$0xff]  ;;  %1270 = vmatprep.subr.mxu1 %v996_v39  ;;  %v994_v41 = vld [vmem:[%s1795_s9 + $0x68] sm:$0xff] }
  0xb3   : > { %1271 = vmatpush3.msra.mxu1 %v996_v39  ;;  %v986_v39 = vld [vmem:[%s1795_s9 + $0x28] sm:$0xff] }
  0xb4   : > { %1357 = vrsqrt.f32 %v446_v43  ;;  %v439_v45 = vsub.f32 %v431_v42, %v435_v44  ;;  %1272 = vmatprep.subr.mxu1 %v995_v40 }
  0xb5   : > { %1273 = vmatpush3.msra.mxu1 %v995_v40  ;;  %v985_v40 = vld [vmem:[%s1795_s9 + $0x20] sm:$0xff] }
  0xb6   : > { %v447_v46 = vadd.f32 1e-05, %v439_v45  ;;  %1274 = vmatprep.subr.mxu1 %v994_v41 }
  0xb7   : > { %v481_v9 = vpop.permute.xlu0 %480  ;;  %1275 = vmatpush3.msra.mxu1 %v994_v41  ;;  %v984_v41 = vld [vmem:[%s1795_s9 + $0x18] sm:$0xff] }
  0xb8   : > { %1359 = vrsqrt.f32 %v447_v46 }
  0xbb   : > { %v1354_v48 = vpop.eup %1353 }
  0xbc   : > { %v1356_v50 = vpop.eup %1355  ;;  %v453_v52 = vmul.f32 %v1354_v48, %v441_v47 }
  0xbd   : > { %v452_v53 = vmul.f32 %v1356_v50, %v440_v49 }
  0xbe   : > { %v463_v56 = vmul.f32 %v1180_v51, %v453_v52 }
  0xbf   : > { %v462_v55 = vmul.f32 %v1180_v51, %v452_v53 }
  0xc0   : > { %v473_v62 = vadd.f32 %v1181_v54, %v463_v56 }
  0xc1   : > { %v1358_v58 = vpop.eup %1357  ;;  %v472_v59 = vadd.f32 %v1181_v54, %v462_v55 }
  0xc2   : > { %v454_v61 = vmul.f32 %v1358_v58, %v442_v57 }
  0xc3   : > { %1237 = vmatpush3.msra.mxu0 %v472_v59 }
  0xc4   : > { %1239 = vmatmul.mubr.msk.f32.vlgmr.msra.gmra.mxu0 %vm483_vm2, %v476_v60  ;;  %1241 = vmatprep.subr.mxu0 %v1439_v16  ;;  %v464_v3 = vmul.f32 %v1180_v51, %v454_v61 }
  0xc5   : > { %v1360_v4 = vpop.eup %1359  ;;  %1242 = vmatpush3.msra.mxu0 %v473_v62  ;;  %1243 = vmatprep.mubr.msk.f32.mxu0 %vm1440_vm1, %v1439_v16 }
  0xc6   : > { %1246 = vmatprep.subr.mxu0 %v1439_v16  ;;  %v474_v5 = vadd.f32 %v1181_v54, %v464_v3  ;;  %v455_v6 = vmul.f32 %v1360_v4, %v443_v63  ;;  %v1186_v4 = vld [vmem:[%s1791_s5] ss:$0 sm:$0xff] }
  0xc8   : > { %1244 = vmatmul.mubr.msk.f32.vlgmr.msra.gmra.mxu0 %vm483_vm2, %v476_v60  ;;  %v465_v7 = vmul.f32 %v1180_v51, %v455_v6 }
  0xc9   : > { %1247 = vmatpush3.msra.mxu0 %v474_v5  ;;  %1248 = vmatprep.mubr.msk.f32.mxu0 %vm1440_vm1, %v1439_v16 }
  0xca   : > { %1251 = vmatprep.subr.mxu0 %v1439_v16  ;;  %v475_v8 = vadd.f32 %v1181_v54, %v465_v7 }
  0xcc   : > { %1249 = vmatmul.mubr.msk.f32.vlgmr.msra.gmra.mxu0 %vm483_vm2, %v476_v60 }
  0xcd   : > { %1252 = vmatpush3.msra.mxu0 %v475_v8  ;;  %1253 = vmatprep.mubr.msk.f32.mxu0 %vm1440_vm1, %v1439_v16  ;;  %v1187_v8 = vld [vmem:[%s1792_s6] ss:$0 sm:$0xff] }
  0xce   : > { %1256 = vmatprep.subr.mxu0 %v856_v36 }
  0xd0   : > { %1254 = vmatmul.mubr.msk.f32.vlgmr.msra.gmra.mxu0 %vm483_vm2, %v476_v60 }
  0xd1   : > { %1257 = vmatpush3.msra.mxu0 %v856_v36  ;;  %v990_v36 = vld [vmem:[%s1795_s9 + $0x48] sm:$0xff] }
 0x184   : > { %v553_v11 = vpop.f32.mrf.mxu0 }
 0x185   : > { %v554_v12 = vadd.f32 %v553_v11, %v481_v9 }
 0x186   : > { %v1240_v13 = vpop.f32.mrf.mxu0 }
 0x187   : > { %v1618_v14 = vadd.f32 %v554_v12, %v1559_v1 }
 0x188   : > { %v623_v15 = vpop.f32.mrf.mxu0 }
 0x189   : > { %v624_v17 = vadd.f32 %v623_v15, %v481_v9  ;;  %v773_v18 = vsel %vm394_vm0, %v1618_v14, 0.0  ;;  %v789_v19 = vmul.f32 %v1618_v14, %v1618_v14 }
 0x18a   : > { %v1245_v20 = vpop.f32.mrf.mxu0  ;;  %774 = vadd.xlane.f32.xlu1 %v773_v18 }
 0x18b   : > { %v1625_v21 = vadd.f32 %v624_v17, %v1557_v0  ;;  %v793_v22 = vsel %vm394_vm0, %v789_v19, 0.0 }
 0x18c   : > { %v693_v16 = vpop.f32.mrf.mxu0 }
 0x18d   : > { %v694_v24 = vadd.f32 %v693_v16, %v481_v9  ;;  %v776_v25 = vsel %vm394_vm0, %v1625_v21, 0.0  ;;  %v790_v26 = vmul.f32 %v1625_v21, %v1625_v21 }
 0x18e   : > { %v1250_v23 = vpop.f32.mrf.mxu0  ;;  %794 = vadd.xlane.f32.xlu1 %v793_v22 }
 0x18f   : > { %v1633_v28 = vadd.f32 %v694_v24, %v1561_v2  ;;  %v796_v0 = vsel %vm394_vm0, %v790_v26, 0.0 }
 0x190   : > { %v763_v1 = vpop.f32.mrf.mxu0 }
 0x191   : > { %v764_v29 = vadd.f32 %v763_v1, %v481_v9  ;;  %v779_v30 = vsel %vm394_vm0, %v1633_v28, 0.0  ;;  %v791_v31 = vmul.f32 %v1633_v28, %v1633_v28 }
 0x192   : > { %777 = vadd.xlane.f32.xlu1 %v776_v25  ;;  %v1255_v27 = vpop.f32.mrf.mxu0 }
 0x193   : > { %v1641_v32 = vadd.f32 %v764_v29, %v1575_v10  ;;  %v799_v33 = vsel %vm394_vm0, %v791_v31, 0.0  ;;  %v855_v10 = vld [vmem:[%s1793_s7 + $0x10] sm:$0xff] }
 0x194   : > { %1258 = vmatprep.subr.mxu0 %v855_v10 }
 0x195   : > { %v782_v2 = vsel %vm394_vm0, %v1641_v32, 0.0  ;;  %v792_v34 = vmul.f32 %v1641_v32, %v1641_v32  ;;  %1259 = vmatpush3.msra.mxu0 %v855_v10  ;;  %v989_v10 = vld [vmem:[%s1795_s9 + $0x40] sm:$0xff] }
 0x196   : > { %797 = vadd.xlane.f32.xlu1 %v796_v0  ;;  %1260 = vmatprep.subr.mxu0 %v854_v37 }
 0x197   : > { %v802_v35 = vsel %vm394_vm0, %v792_v34, 0.0  ;;  %1261 = vmatpush3.msra.mxu0 %v854_v37  ;;  %v992_v34 = vld [vmem:[%s1795_s9 + $0x58] sm:$0xff] }
 0x198   : > { %1262 = vmatprep.subr.mxu0 %v853_v38  ;;  %v988_v37 = vld [vmem:[%s1795_s9 + $0x38] sm:$0xff] }
 0x199   : > { %1263 = vmatpush3.msra.mxu0 %v853_v38  ;;  %v987_v38 = vld [vmem:[%s1795_s9 + $0x30] sm:$0xff] }
 0x19a   : > { %780 = vadd.xlane.f32.xlu1 %v779_v30 }
 0x19e   : > { %800 = vadd.xlane.f32.xlu1 %v799_v33 }
 0x1a2   : > { %783 = vadd.xlane.f32.xlu1 %v782_v2  ;;  %v993_v2 = vld [vmem:[%s1795_s9 + $0x60] sm:$0xff] }
 0x1a3   : > { %1276 = vmatprep.subr.mxu1 %v993_v2 }
 0x1a4   : > { %1277 = vmatpush3.msra.mxu1 %v993_v2 }
 0x1a5   : > { %1278 = vmatprep.subr.mxu1 %v992_v34 }
 0x1a6   : > { %803 = vadd.xlane.f32.xlu1 %v802_v35  ;;  %1279 = vmatpush3.msra.mxu1 %v992_v34  ;;  %v991_v35 = vld [vmem:[%s1795_s9 + $0x50] sm:$0xff] }
 0x1a7   : > { %1280 = vmatprep.subr.mxu1 %v991_v35 }
 0x1a8   : > { %1281 = vmatpush3.msra.mxu1 %v991_v35 }
 0x1a9   : > { %1282 = vmatprep.subr.mxu1 %v990_v36 }
 0x1aa   : > { %1283 = vmatpush3.msra.mxu1 %v990_v36 }
 0x1ab   : > { %1284 = vmatprep.subr.mxu1 %v989_v10 }
 0x1ac   : > { %1285 = vmatpush3.msra.mxu1 %v989_v10 }
 0x1ad   : > { %1286 = vmatprep.subr.mxu1 %v988_v37 }
 0x1ae   : > { %1287 = vmatpush3.msra.mxu1 %v988_v37 }
 0x1af   : > { %1288 = vmatprep.subr.mxu1 %v987_v38 }
 0x1b0   : > { %1289 = vmatpush3.msra.mxu1 %v987_v38 }
 0x1b1   : > { %1290 = vmatprep.subr.mxu1 %v986_v39 }
 0x1b2   : > { %1291 = vmatpush3.msra.mxu1 %v986_v39 }
 0x1b3   : > { %1292 = vmatprep.subr.mxu1 %v985_v40 }
 0x1b4   : > { %1293 = vmatpush3.msra.mxu1 %v985_v40 }
 0x1b5   : > { %1294 = vmatprep.subr.mxu1 %v984_v41 }
 0x1b6   : > { %1295 = vmatpush3.msra.mxu1 %v984_v41 }
 0x213   : > { %v775_v42 = vpop.xlane.xlu1 %774 }
 0x214   : > { %v785_v43 = vmul.f32 0.03125, %v775_v42  ;;  %v983_v42 = vld [vmem:[%s1795_s9 + $0x10] sm:$0xff] }
 0x215   : > { %1296 = vmatprep.subr.mxu1 %v983_v42 }
 0x216   : > { %v809_v45 = vmul.f32 %v785_v43, %v785_v43  ;;  %v817_v61 = vsub.f32 %v1618_v14, %v785_v43  ;;  %1297 = vmatpush3.msra.mxu1 %v983_v42  ;;  %v982_v43 = vld [vmem:[%s1795_s9 + $0x8] sm:$0xff] }
 0x217   : > { %v795_v44 = vpop.xlane.xlu1 %794  ;;  %1298 = vmatprep.subr.mxu1 %v982_v43 }
 0x218   : > { %v805_v46 = vmul.f32 0.03125, %v795_v44  ;;  %1299 = vmatpush3.msra.mxu1 %v982_v43  ;;  %v981_v44 = vld [vmem:[%s1795_s9] sm:$0xff] }
 0x219   : > { %1300 = vmatprep.subr.mxu1 %v981_v44 }
 0x21a   : > { %v813_v47 = vsub.f32 %v805_v46, %v809_v45  ;;  %1301 = vmatpush3.msra.mxu1 %v981_v44  ;;  %v1188_v45 = vld [vmem:[%s1794_s8] ss:$0 sm:$0xff] }
 0x21b   : > { %v778_v48 = vpop.xlane.xlu1 %777 }
 0x21c   : > { %v821_v49 = vadd.f32 1e-05, %v813_v47  ;;  %v786_v50 = vmul.f32 0.03125, %v778_v48 }
 0x21e   : > { %1361 = vrsqrt.f32 %v821_v49  ;;  %v810_v52 = vmul.f32 %v786_v50, %v786_v50  ;;  %v818_v17 = vsub.f32 %v1625_v21, %v786_v50 }
 0x21f   : > { %v798_v51 = vpop.xlane.xlu1 %797 }
 0x220   : > { %v806_v53 = vmul.f32 0.03125, %v798_v51 }
 0x222   : > { %v814_v54 = vsub.f32 %v806_v53, %v810_v52 }
 0x223   : > { %v781_v55 = vpop.xlane.xlu1 %780 }
 0x224   : > { %v822_v56 = vadd.f32 1e-05, %v814_v54  ;;  %v787_v57 = vmul.f32 0.03125, %v781_v55 }
 0x226   : > { %1363 = vrsqrt.f32 %v822_v56  ;;  %v811_v59 = vmul.f32 %v787_v57, %v787_v57  ;;  %v819_v1 = vsub.f32 %v1633_v28, %v787_v57 }
 0x227   : > { %v801_v58 = vpop.xlane.xlu1 %800 }
 0x228   : > { %v807_v60 = vmul.f32 0.03125, %v801_v58 }
 0x22a   : > { %v815_v62 = vsub.f32 %v807_v60, %v811_v59 }
 0x22b   : > { %v1362_v63 = vpop.eup %1361  ;;  %v784_v3 = vpop.xlane.xlu1 %783 }
 0x22c   : > { %v823_v5 = vadd.f32 1e-05, %v815_v62  ;;  %v788_v6 = vmul.f32 0.03125, %v784_v3  ;;  %v829_v7 = vmul.f32 %v1362_v63, %v817_v61 }
 0x22e   : > { %1365 = vrsqrt.f32 %v823_v5  ;;  %v839_v9 = vmul.f32 %v1186_v4, %v829_v7  ;;  %v812_v12 = vmul.f32 %v788_v6, %v788_v6  ;;  %v820_v0 = vsub.f32 %v1641_v32, %v788_v6 }
 0x22f   : > { %v804_v11 = vpop.xlane.xlu1 %803 }
 0x230   : > { %v808_v13 = vmul.f32 0.03125, %v804_v11  ;;  %v849_v15 = vadd.f32 %v1187_v8, %v839_v9 }
 0x232   : > { %v816_v18 = vsub.f32 %v808_v13, %v812_v12  ;;  %1264 = vmatprep.mubr.msk.f32.mxu0 %vm394_vm0, %v849_v15  ;;  %v1193_v15 = vld [vmem:[%s1796_s10] ss:$0 sm:$0xff] }
 0x233   : > { %v1364_v19 = vpop.eup %1363 }
 0x234   : > { %v824_v20 = vadd.f32 1e-05, %v816_v18  ;;  %v830_v16 = vmul.f32 %v1364_v19, %v818_v17 }
 0x236   : > { %1367 = vrsqrt.f32 %v824_v20  ;;  %v840_v22 = vmul.f32 %v1186_v4, %v830_v16 }
 0x238   : > { %v850_v23 = vadd.f32 %v1187_v8, %v840_v22 }
 0x23a   : > { %1265 = vmatmul.mubr.msk.f32.vlgmr.msra.gmra.mxu0 %vm394_vm0, %v850_v23 }
 0x23b   : > { %v1366_v24 = vpop.eup %1365 }
 0x23c   : > { %v831_v25 = vmul.f32 %v1366_v24, %v819_v1 }
 0x23e   : > { %v841_v26 = vmul.f32 %v1186_v4, %v831_v25 }
 0x240   : > { %v851_v27 = vadd.f32 %v1187_v8, %v841_v26 }
 0x242   : > { %1267 = vmatprep.mubr.msk.f32.mxu0 %vm394_vm0, %v851_v27 }
 0x243   : > { %v1368_v29 = vpop.eup %1367 }
 0x244   : > { %v832_v30 = vmul.f32 %v1368_v29, %v820_v0 }
 0x246   : > { %v842_v31 = vmul.f32 %v1186_v4, %v832_v30 }
 0x248   : > { %v852_v33 = vadd.f32 %v1187_v8, %v842_v31 }
 0x24a   : > { %1268 = vmatmul.mubr.msk.f32.gmra.mxu0 %vm394_vm0, %v852_v33 }
 0x2fa   : > { %v1266_v46 = vpop.f32.mrf.mxu0 }
 0x2fb   : > { %v948_v47 = vadd.f32 %v1266_v46, %v1188_v45 }
 0x2fc   : > { %v942_v48 = vpop.f32.mrf.mxu0 }
 0x2fd   : > { %v966_v49 = vmul.f32 0.70710677, %v948_v47  ;;  %v943_v50 = vadd.f32 %v1188_v45, %v942_v48  ;;  %v962_v63 = vmul.f32 0.5, %v948_v47 }
 0x2ff   : > { %1369 = verf.f32 %v966_v49  ;;  %v965_v51 = vmul.f32 0.70710677, %v943_v50  ;;  %v961_v61 = vmul.f32 0.5, %v943_v50 }
 0x301   : > { %1371 = verf.f32 %v965_v51 }
 0x30a   : > { %v1269_v52 = vpop.f32.mrf.mxu0 }
 0x30b   : > { %v958_v53 = vadd.f32 %v1269_v52, %v1188_v45 }
 0x30c   : > { %v1370_v54 = vpop.eup %1369  ;;  %v952_v55 = vpop.f32.mrf.mxu0 }
 0x30d   : > { %v968_v56 = vmul.f32 0.70710677, %v958_v53  ;;  %v953_v57 = vadd.f32 %v1188_v45, %v952_v55  ;;  %v974_v59 = vadd.f32 1.0, %v1370_v54  ;;  %v964_v11 = vmul.f32 0.5, %v958_v53 }
 0x30e   : > { %v1372_v58 = vpop.eup %1371 }
 0x30f   : > { %1373 = verf.f32 %v968_v56  ;;  %v967_v60 = vmul.f32 0.70710677, %v953_v57  ;;  %v973_v62 = vadd.f32 1.0, %v1372_v58  ;;  %v978_v4 = vmul.f32 %v974_v59, %v962_v63 }
 0x310   : > { %v963_v8 = vmul.f32 0.5, %v953_v57 }
 0x311   : > { %1375 = verf.f32 %v967_v60  ;;  %v977_v3 = vmul.f32 %v973_v62, %v961_v61 }
 0x313   : > { %1302 = vmatprep.mubr.f32.mxu1 %v977_v3 }
 0x314   : > { %1303 = vmatmul.mubr.f32.vlgmr.msra.gmra.mxu1 %v978_v4 }
 0x31c   : > { %v1374_v5 = vpop.eup %1373 }
 0x31d   : > { %v976_v7 = vadd.f32 1.0, %v1374_v5 }
 0x31e   : > { %v1376_v6 = vpop.eup %1375 }
 0x31f   : > { %v975_v9 = vadd.f32 1.0, %v1376_v6  ;;  %v980_v13 = vmul.f32 %v976_v7, %v964_v11 }
 0x321   : > { %v979_v12 = vmul.f32 %v975_v9, %v963_v8 }
 0x323   : > { %1305 = vmatprep.mubr.f32.mxu1 %v979_v12 }
 0x324   : > { %1306 = vmatmul.mubr.f32.gmra.mxu1 %v980_v13 }
 0x3d4   : > { %v1304_v17 = vpop.f32.mrf.mxu1 }
 0x3d5   : > { %v1076_v18 = vadd.f32 %v1304_v17, %v1193_v15 }
 0x3d6   : > { %v1070_v19 = vpop.f32.mrf.mxu1 }
 0x3d7   : > { %v1090_v20 = vadd.f32 %v1076_v18, %v1625_v21  ;;  %v1071_v16 = vadd.f32 %v1193_v15, %v1070_v19 }
 0x3d9   : > { %1094 = vst.msk [vmem:[%s380_s13 + $0x8] sm:$0xff] %vm394_vm0, %v1090_v20  ;;  %v1089_v22 = vadd.f32 %v1071_v16, %v1618_v14 }
 0x3db   : > { %1093 = vst.msk [vmem:[%s380_s13] sm:$0xff] %vm394_vm0, %v1089_v22 }
 0x3e4   : > { %v1307_v23 = vpop.f32.mrf.mxu1 }
 0x3e5   : > { %v1086_v1 = vadd.f32 %v1307_v23, %v1193_v15 }
 0x3e6   : > { %v1080_v24 = vpop.f32.mrf.mxu1 }
 0x3e7   : > { %v1092_v25 = vadd.f32 %v1086_v1, %v1641_v32  ;;  %v1081_v26 = vadd.f32 %v1193_v15, %v1080_v24 }
 0x3e9   : > { %1096 = vst.msk [vmem:[%s380_s13 + $0x18] sm:$0xff] %vm394_vm0, %v1092_v25  ;;  %v1091_v14 = vadd.f32 %v1081_v26, %v1633_v28 }
 0x3eb   : > { %1095 = vst.msk [vmem:[%s380_s13 + $0x10] sm:$0xff] %vm394_vm0, %v1091_v14 }
 0x3ec   : > { %1390 = shalt.err (!%p1387_p3)
}
 0x3ed   : > { %s1391_s25 = scalar_lea.hbm %s1739_s24, 512  ;;  %s1395_s22 = scalar_lea.hbm %s1797_s11, 1024 }
 0x3ee   : > { %p1392_p4 = scmp.ne.s32.totalorder %s1739_s24, %s1391_s25  ;;  %p1396_p9 = scmp.lt.s32.totalorder %s1739_s24, %s1797_s11 }
 0x3ef   : > { %p1397_p10 = scmp.lt.s32.totalorder %s1395_s22, %s1391_s25 }
 0x3f0   : > { %p1393_p7 = pnand %p1392_p4, %p1543_p5 }
 0x3f1   : > { %p1398_p11 = por %p1397_p10, %p1396_p9 }
 0x3f2   : > { %p1394_p8 = pneg %p1393_p7 }
 0x3f4   : > { %p1399_p12 = pnand %p1398_p11, %p1394_p8 }
 0x3f6   : > { %1402 = shalt.err (!%p1399_p12)
}
 0x3f7   : > { %s1443_s29 = smov 128   ;;  %s1444_s12 = smov 8  }
 0x3f8   : > { %1308 = dma.vmem_to_hbm [thread:$0]  (%p1543_p5), %s1741_s14, 512, %s1739_s24, %s1746_s21, %s1443_s29, %s1443_s29, %s1444_s12  }
 0x3f9 PF: > { %p1314_p13 = scmp.ge.s32.totalorder %s1437_s20, 2  ;;  %s1126_s15 = sand.u32 1, %s1425_s17  }
 0x3fa   : > { %s1127_s0 = scalar_lea.sflag [#allocation3], %s1126_s15 }
 0x3fb   : > { %p1311_p0 = pnand %p1314_p13, %p1547_p6 }
 0x3fd   : > { %p1312_p1 = pneg %p1311_p0 }
 0x3ff   : > { %1420 = dma.done.wait (%p1312_p1), %s1127_s0, 512  }
 0x400   : > { %1422 = vsyncadd (%p1312_p1), %s1127_s0, 4294966784  ;;  %p21_p2 = scmp.ge.s32.totalorder %s1530_s23, 4   ;;  %s1802_s17 = smov %s1429_s18 }
 0x401   : > { %s1803_s18 = smov %s1433_s19  ;;  %s1804_s19 = smov %s1541_s26 }
 0x402   : > { %s1805_s20 = smov %s1530_s23  ;;  %23 = sbr.rel (!%p21_p2) target bundleno = 5 (0x5), region = 99 }
 0x407   :  { %1132 = vsyncpa [#allocation3], 1 }
 0x408   :  { %1134 = vsyncpa [#allocation3 + $0x1], 1 }

</bundles_post_ra>
